<compile_context>
chip_gen: v6e
topology: v6e:2x2x1
jax: 0.10.0
libtpu: 0.0.40
codegen_flags: <defaults>
</compile_context>

<pallas_src>
import jax
import jax.numpy as jnp
from jax.experimental import pallas as pl
from jax.experimental.pallas import tpu as pltpu

HIDDEN = 256
LANE = 128
TB_MAX = 1024  # max batch-tile rows (multiple of 256)


def _round_up(x, m):
    return ((x + m - 1) // m) * m


def _pick_batch_tile(B):
    """Choose the batch tile size TB.

    Small batches: one tile, rounded to a multiple of 16 rows (bf16 MXU LHS
    packs 16 sublanes/vreg). Large batches: as big as possible (amortizes the
    per-grid-step overhead) but never fewer than 2 grid steps so the
    "parallel" batch axis can shard across v7x's two TensorCores.
    """
    if B <= 256:
        return _round_up(max(B, 8), 16)
    return min(TB_MAX, _round_up(pl.cdiv(B, 2), 256))


def _actor_kernel(ma_ref, x_ref, w1_ref, b1_ref, w2_ref, b2_ref, w3_ref,
                  b3_ref, o_ref):
    # MXU path in bf16 with f32 accumulation; h1/h2 bias+ReLU in bf16
    # (bf16 VALU on v6e/v7x; lowered transparently on v5e).
    x = x_ref[...].astype(jnp.bfloat16)

    h1 = jnp.dot(x, w1_ref[...], preferred_element_type=jnp.float32)
    h1 = jnp.maximum(h1.astype(jnp.bfloat16) + b1_ref[...], 0)

    h2 = jnp.dot(h1, w2_ref[...], preferred_element_type=jnp.float32)
    h2 = jnp.maximum(h2.astype(jnp.bfloat16) + b2_ref[...], 0)

    h3 = jnp.dot(h2, w3_ref[...], preferred_element_type=jnp.float32)

    max_action = ma_ref[0, 0]                       # SMEM scalar (free)
    o_ref[...] = (max_action * jnp.tanh(h3 + b3_ref[...])).astype(o_ref.dtype)


def actor_forward(state, params, max_action):
    """state: (B, state_dim) f32.  params from init_actor_params."""
    w1, b1 = params["w1"], params["b1"]
    w2, b2 = params["w2"], params["b2"]
    w3, b3 = params["w3"], params["b3"]          # already padded to A_pad
    A = params["action_dim"]

    B, S = state.shape
    A_pad = w3.shape[1]

    TB = _pick_batch_tile(B)
    grid = (pl.cdiv(B, TB),)                     # ragged last tile handled by Pallas

    ma = jnp.full((1, 1), max_action, jnp.float32)

    const = lambda i: (0, 0)                     # weights/biases stay resident

    out = pl.pallas_call(
        _actor_kernel,
        out_shape=jax.ShapeDtypeStruct((B, A_pad), jnp.float32),
        grid=grid,
        in_specs=[
            pl.BlockSpec(memory_space=pltpu.MemorySpace.SMEM),   # max_action
            pl.BlockSpec((TB, S), lambda i: (i, 0)),             # state tile
            pl.BlockSpec((S, HIDDEN), const),                    # w1
            pl.BlockSpec((1, HIDDEN), const),                    # b1 (bf16)
            pl.BlockSpec((HIDDEN, HIDDEN), const),               # w2
            pl.BlockSpec((1, HIDDEN), const),                    # b2 (bf16)
            pl.BlockSpec((HIDDEN, A_pad), const),                # w3 (padded)
            pl.BlockSpec((1, A_pad), const),                     # b3 (padded, f32)
        ],
        out_specs=pl.BlockSpec((TB, A_pad), lambda i: (i, 0)),
        compiler_params=pltpu.CompilerParams(
            dimension_semantics=("parallel",)),
    )(ma, state, w1, b1, w2, b2, w3, b3)

    return out[:, :A]


def init_actor_params(key, state_dim, action_dim):
    """Deterministic synthetic init (uniform, roughly torch-Linear scaled).

    Weights pre-transposed to (in, out); w1/w2/w3 + b1/b2 in bf16 (bf16 VALU
    path), b3 in f32.  w3/b3 are pre-padded to a lane-dense output width so
    the forward pass never pads.
    """
    ks = jax.random.split(key, 6)

    def unif(k, shape, fan_in, dtype):
        bound = 1.0 / jnp.sqrt(jnp.float32(fan_in))
        return jax.random.uniform(k, shape, jnp.float32, -bound, bound).astype(dtype)

    A_pad = _round_up(max(action_dim, LANE), LANE)

    w3 = unif(ks[4], (HIDDEN, action_dim), HIDDEN, jnp.bfloat16)
    b3 = unif(ks[5], (1, action_dim), HIDDEN, jnp.float32)
    if A_pad != action_dim:
        w3 = jnp.pad(w3, ((0, 0), (0, A_pad - action_dim)))
        b3 = jnp.pad(b3, ((0, 0), (0, A_pad - action_dim)))

    return {
        "w1": unif(ks[0], (state_dim, HIDDEN), state_dim, jnp.bfloat16),
        "b1": unif(ks[1], (1, HIDDEN), state_dim, jnp.bfloat16),
        "w2": unif(ks[2], (HIDDEN, HIDDEN), HIDDEN, jnp.bfloat16),
        "b2": unif(ks[3], (1, HIDDEN), HIDDEN, jnp.bfloat16),
        "w3": w3,
        "b3": b3,
        "action_dim": action_dim,
    }


def actor_reference(state, params, max_action):
    """Pure-JAX reference with the same dtype path as the kernel."""
    A = params["action_dim"]
    x = state.astype(jnp.bfloat16)
    h1 = jnp.dot(x, params["w1"], preferred_element_type=jnp.float32)
    h1 = jnp.maximum(h1.astype(jnp.bfloat16) + params["b1"], 0)
    h2 = jnp.dot(h1, params["w2"], preferred_element_type=jnp.float32)
    h2 = jnp.maximum(h2.astype(jnp.bfloat16) + params["b2"], 0)
    h3 = jnp.dot(h2, params["w3"], preferred_element_type=jnp.float32) + params["b3"]
    return (max_action * jnp.tanh(h3))[:, :A]


if __name__ == "__main__":
    key = jax.random.PRNGKey(0)
    k_params, k_small, k_big = jax.random.split(key, 3)

    state_dim = 16
    action_dim = 4
    max_action = 2.0
    params = init_actor_params(k_params, state_dim, action_dim)

    # Small batch: single (partial) tile of 16 rows.
    state_small = jax.random.normal(k_small, (8, state_dim), jnp.float32)
    out_small = jax.block_until_ready(actor_forward(state_small, params, max_action))
    ref_small = actor_reference(state_small, params, max_action)
    assert out_small.shape == (8, action_dim), out_small.shape
    assert jnp.allclose(out_small, ref_small, atol=2e-3, rtol=2e-3), "small-batch mismatch"

    # Larger batch: two grid steps with a ragged last tile (384 = 256 + 128).
    state_big = jax.random.normal(k_big, (384, state_dim), jnp.float32)
    out_big = jax.block_until_ready(actor_forward(state_big, params, max_action))
    ref_big = actor_reference(state_big, params, max_action)
    assert out_big.shape == (384, action_dim), out_big.shape
    assert jnp.allclose(out_big, ref_big, atol=2e-3, rtol=2e-3), "batched mismatch"

    print("KERNEL_OK")
</pallas_src>

<mosaic_0001>
module attributes {stable_mosaic.version = 11 : i64} {
  func.func @_actor_kernel(%arg0: i32, %arg1: memref<1x1xf32, #tpu.memory_space<smem>>, %arg2: memref<16x16xf32, #tpu.memory_space<vmem>>, %arg3: memref<16x256xbf16, #tpu.memory_space<vmem>>, %arg4: memref<1x256xbf16, #tpu.memory_space<vmem>>, %arg5: memref<256x256xbf16, #tpu.memory_space<vmem>>, %arg6: memref<1x256xbf16, #tpu.memory_space<vmem>>, %arg7: memref<256x128xbf16, #tpu.memory_space<vmem>>, %arg8: memref<1x128xf32, #tpu.memory_space<vmem>>, %arg9: memref<16x128xf32, #tpu.memory_space<vmem>>) attributes {dimension_semantics = [#tpu.dimension_semantics<parallel>], iteration_bounds = array<i64: 1>, scalar_prefetch = 0 : i64, scratch_operands = 0 : i64, tpu.core_type = #tpu.core_type<tc>, window_params = [{transform_indices = @transform_0, window_bounds = array<i64: 1, 1>}, {transform_indices = @transform_1, window_bounds = array<i64: 16, 16>}, {pipeline_mode = #tpu.pipeline_mode<synchronous>, transform_indices = @transform_2, window_bounds = array<i64: 16, 256>}, {pipeline_mode = #tpu.pipeline_mode<synchronous>, transform_indices = @transform_3, window_bounds = array<i64: 1, 256>}, {pipeline_mode = #tpu.pipeline_mode<synchronous>, transform_indices = @transform_4, window_bounds = array<i64: 256, 256>}, {pipeline_mode = #tpu.pipeline_mode<synchronous>, transform_indices = @transform_5, window_bounds = array<i64: 1, 256>}, {pipeline_mode = #tpu.pipeline_mode<synchronous>, transform_indices = @transform_6, window_bounds = array<i64: 256, 128>}, {pipeline_mode = #tpu.pipeline_mode<synchronous>, transform_indices = @transform_7, window_bounds = array<i64: 1, 128>}, {transform_indices = @transform_8, window_bounds = array<i64: 16, 128>}]} {
    %c0 = arith.constant 0 : index
    %c0_0 = arith.constant 0 : index
    %0 = vector.load %arg2[%c0, %c0_0] : memref<16x16xf32, #tpu.memory_space<vmem>>, vector<16x16xf32>
    %1 = arith.truncf %0 : vector<16x16xf32> to vector<16x16xbf16>
    %c0_1 = arith.constant 0 : index
    %c0_2 = arith.constant 0 : index
    %2 = vector.load %arg3[%c0_1, %c0_2] : memref<16x256xbf16, #tpu.memory_space<vmem>>, vector<16x256xbf16>
    %cst = arith.constant dense<0.000000e+00> : vector<16x256xf32>
    %3 = tpu.matmul %1, %2, %cst {dimension_numbers = #tpu.dot_dimension_numbers<[1], [0], [0], [1], [0, 0, 1, 1], [], []>} : vector<16x16xbf16>, vector<16x256xbf16>, vector<16x256xf32> -> vector<16x256xf32>
    %4 = arith.truncf %3 : vector<16x256xf32> to vector<16x256xbf16>
    %c0_3 = arith.constant 0 : index
    %c0_4 = arith.constant 0 : index
    %5 = vector.load %arg4[%c0_3, %c0_4] : memref<1x256xbf16, #tpu.memory_space<vmem>>, vector<1x256xbf16>
    %6 = vector.broadcast %5 : vector<1x256xbf16> to vector<16x256xbf16>
    %7 = arith.addf %4, %6 : vector<16x256xbf16>
    %cst_5 = arith.constant 0.000000e+00 : bf16
    %8 = vector.broadcast %cst_5 : bf16 to vector<16x256xbf16>
    %9 = arith.maximumf %7, %8 : vector<16x256xbf16>
    %c0_6 = arith.constant 0 : index
    %c0_7 = arith.constant 0 : index
    %10 = vector.load %arg5[%c0_6, %c0_7] : memref<256x256xbf16, #tpu.memory_space<vmem>>, vector<256x256xbf16>
    %cst_8 = arith.constant dense<0.000000e+00> : vector<16x256xf32>
    %11 = tpu.matmul %9, %10, %cst_8 {dimension_numbers = #tpu.dot_dimension_numbers<[1], [0], [0], [1], [0, 0, 1, 1], [], []>} : vector<16x256xbf16>, vector<256x256xbf16>, vector<16x256xf32> -> vector<16x256xf32>
    %12 = arith.truncf %11 : vector<16x256xf32> to vector<16x256xbf16>
    %c0_9 = arith.constant 0 : index
    %c0_10 = arith.constant 0 : index
    %13 = vector.load %arg6[%c0_9, %c0_10] : memref<1x256xbf16, #tpu.memory_space<vmem>>, vector<1x256xbf16>
    %14 = vector.broadcast %13 : vector<1x256xbf16> to vector<16x256xbf16>
    %15 = arith.addf %12, %14 : vector<16x256xbf16>
    %cst_11 = arith.constant 0.000000e+00 : bf16
    %16 = vector.broadcast %cst_11 : bf16 to vector<16x256xbf16>
    %17 = arith.maximumf %15, %16 : vector<16x256xbf16>
    %c0_12 = arith.constant 0 : index
    %c0_13 = arith.constant 0 : index
    %18 = vector.load %arg7[%c0_12, %c0_13] : memref<256x128xbf16, #tpu.memory_space<vmem>>, vector<256x128xbf16>
    %cst_14 = arith.constant dense<0.000000e+00> : vector<16x128xf32>
    %19 = tpu.matmul %17, %18, %cst_14 {dimension_numbers = #tpu.dot_dimension_numbers<[1], [0], [0], [1], [0, 0, 1, 1], [], []>} : vector<16x256xbf16>, vector<256x128xbf16>, vector<16x128xf32> -> vector<16x128xf32>
    %c0_15 = arith.constant 0 : index
    %c0_16 = arith.constant 0 : index
    %20 = memref.load %arg1[%c0_15, %c0_16] : memref<1x1xf32, #tpu.memory_space<smem>>
    %c0_17 = arith.constant 0 : index
    %c0_18 = arith.constant 0 : index
    %21 = vector.load %arg8[%c0_17, %c0_18] : memref<1x128xf32, #tpu.memory_space<vmem>>, vector<1x128xf32>
    %22 = vector.broadcast %21 : vector<1x128xf32> to vector<16x128xf32>
    %23 = arith.addf %19, %22 : vector<16x128xf32>
    %24 = math.tanh %23 : vector<16x128xf32>
    %25 = vector.broadcast %20 : f32 to vector<16x128xf32>
    %26 = arith.mulf %25, %24 : vector<16x128xf32>
    %c0_19 = arith.constant 0 : index
    %c0_20 = arith.constant 0 : index
    %27 = vector.load %arg9[%c0_19, %c0_20] : memref<16x128xf32, #tpu.memory_space<vmem>>, vector<16x128xf32>
    tpu.vector_store %arg9[%c0_19, %c0_20], %26 {strides = array<i32>} : memref<16x128xf32, #tpu.memory_space<vmem>>, vector<16x128xf32>,
    return
  }
  func.func @transform_0(%arg0: i32) -> (i32, i32) {
    %c0_i32 = arith.constant 0 : i32
    %c0_i32_0 = arith.constant 0 : i32
    %c0_i32_1 = arith.constant 0 : i32
    return %c0_i32, %c0_i32_0 : i32, i32
  }
  func.func @transform_1(%arg0: i32) -> (i32, i32) {
    %c0_i32 = arith.constant 0 : i32
    %c0_i32_0 = arith.constant 0 : i32
    return %arg0, %c0_i32 : i32, i32
  }
  func.func @transform_2(%arg0: i32) -> (i32, i32) {
    %c0_i32 = arith.constant 0 : i32
    %c0_i32_0 = arith.constant 0 : i32
    %c0_i32_1 = arith.constant 0 : i32
    return %c0_i32, %c0_i32_0 : i32, i32
  }
  func.func @transform_3(%arg0: i32) -> (i32, i32) {
    %c0_i32 = arith.constant 0 : i32
    %c0_i32_0 = arith.constant 0 : i32
    %c0_i32_1 = arith.constant 0 : i32
    return %c0_i32, %c0_i32_0 : i32, i32
  }
  func.func @transform_4(%arg0: i32) -> (i32, i32) {
    %c0_i32 = arith.constant 0 : i32
    %c0_i32_0 = arith.constant 0 : i32
    %c0_i32_1 = arith.constant 0 : i32
    return %c0_i32, %c0_i32_0 : i32, i32
  }
  func.func @transform_5(%arg0: i32) -> (i32, i32) {
    %c0_i32 = arith.constant 0 : i32
    %c0_i32_0 = arith.constant 0 : i32
    %c0_i32_1 = arith.constant 0 : i32
    return %c0_i32, %c0_i32_0 : i32, i32
  }
  func.func @transform_6(%arg0: i32) -> (i32, i32) {
    %c0_i32 = arith.constant 0 : i32
    %c0_i32_0 = arith.constant 0 : i32
    %c0_i32_1 = arith.constant 0 : i32
    return %c0_i32, %c0_i32_0 : i32, i32
  }
  func.func @transform_7(%arg0: i32) -> (i32, i32) {
    %c0_i32 = arith.constant 0 : i32
    %c0_i32_0 = arith.constant 0 : i32
    %c0_i32_1 = arith.constant 0 : i32
    return %c0_i32, %c0_i32_0 : i32, i32
  }
  func.func @transform_8(%arg0: i32) -> (i32, i32) {
    %c0_i32 = arith.constant 0 : i32
    %c0_i32_0 = arith.constant 0 : i32
    return %arg0, %c0_i32 : i32, i32
  }
}

</mosaic_0001>

<bundles_post_ra>
// kernel: tpu_custom_call.1
= control target key start
LH: loop header
LB: loop body
LE: loop exit
PB: predicated region body
PF: predicated region fallthrough
CT: control target
= control target key end

     0   :  { %14 = vsyncpa [#allocation4], 0  ;;  %s1041_s0 = inlined_call_operand.<no memory space> [shape: f32[1,1], index: 0, kind: input, shape index: {}]   ;;  %s1042_s1 = inlined_call_operand.hbm [shape: f32[8,16], index: 1, kind: input, shape index: {}]   ;;  %s1043_s2 = inlined_call_operand.hbm [shape: bf16[16,256], index: 2, kind: input, shape index: {}]   ;;  %s1044_s3 = inlined_call_operand.vmem [shape: bf16[1,256], index: 3, kind: input, shape index: {}]   ;;  %s1045_s4 = inlined_call_operand.hbm [shape: bf16[256,256], index: 4, kind: input, shape index: {}]   ;;  %s1046_s5 = inlined_call_operand.vmem [shape: bf16[1,256], index: 5, kind: input, shape index: {}]   ;;  %s1047_s6 = inlined_call_operand.hbm [shape: bf16[256,128], index: 6, kind: input, shape index: {}]   ;;  %s1048_s7 = inlined_call_operand.vmem [shape: f32[1,128], index: 7, kind: input, shape index: {}]   ;;  %s1049_s8 = inlined_call_operand.hbm [shape: f32[8,128], index: 8, kind: output, shape index: {}]  }
   0x1   :  { %15 = vsyncpa [#allocation7], 0 }
   0x2   :  { %16 = vsyncpa [#allocation10], 0 }
   0x3   :  { %17 = vsyncpa [#allocation5], 0 }
   0x4   :  { %24 = vsyncadd [#allocation4], 128  ;;  %s941_s27 = smov [#allocation6]   ;;  %s942_s29 = smov [#allocation3]  }
   0x5   :  { %s37_s28 = sshll.u32 %s941_s27, 4  ;;  %s25_s30 = sshll.u32 %s942_s29, 4  ;;  %s38_s28 = int_to_ptr.vmem [resolvable:$true] %s37_s28  ;;  %s26_s30 = int_to_ptr.vmem [resolvable:$true] %s25_s30 }
   0x6   :  { %s841_s9 = scalar_lea.vmem %s38_s28, 256  ;;  %p846_p1 = scmp.lt.s32.totalorder %s38_s28, %s38_s28 }
   0x7   :  { %p842_p0 = scmp.ne.s32.totalorder %s38_s28, %s841_s9  ;;  %p847_p2 = scmp.lt.s32.totalorder %s841_s9, %s841_s9 }
   0x9   :  { %p848_p3 = por %p847_p2, %p846_p1 }
   0xb   :  { %p849_p4 = pnand %p848_p3, %p842_p0 }
   0xd   :  { %852 = shalt.err (!%p849_p4)
}
   0xe   :  { %s943_s10 = smov 128   ;;  %s944_s11 = smov 8  }
   0xf   :  { %43 = dma.hbm_to_vmem [thread:$0]  %s1043_s2, 256, %s38_s28, [#allocation7], %s943_s10, %s943_s10, %s944_s11  }
  0x10   :  { %s861_s14 = scalar_lea.vmem %s26_s30, 128  ;;  %s865_s15 = scalar_lea.vmem %s26_s30, 256 }
  0x11   :  { %p862_p5 = scmp.ne.s32.totalorder %s26_s30, %s861_s14  ;;  %p866_p6 = scmp.lt.s32.totalorder %s26_s30, %s26_s30 }
  0x12   :  { %p867_p7 = scmp.lt.s32.totalorder %s865_s15, %s861_s14 }
  0x14   :  { %p868_p8 = por %p867_p7, %p866_p6 }
  0x16   :  { %p869_p9 = pnand %p868_p8, %p862_p5 }
  0x18   :  { %872 = shalt.err (!%p869_p9)
}
  0x19   :  { %31 = dma.hbm_to_vmem [thread:$0]  %s1042_s1, 128, %s26_s30, [#allocation4], %s943_s10, %s943_s10, %s944_s11  }
  0x1a   :  { %s945_s18 = smov [#allocation8]   ;;  %s946_s20 = smov [#allocation9]  }
  0x1b   :  { %s51_s19 = sshll.u32 %s945_s18, 4  ;;  %s65_s21 = sshll.u32 %s946_s20, 4  ;;  %s52_s19 = int_to_ptr.vmem [resolvable:$true] %s51_s19  ;;  %s66_s21 = int_to_ptr.vmem [resolvable:$true] %s65_s21 }
  0x1c   :  { %s881_s2 = scalar_lea.vmem %s52_s19, 4096  ;;  %p886_p11 = scmp.lt.s32.totalorder %s52_s19, %s52_s19 }
  0x1d   :  { %p882_p10 = scmp.ne.s32.totalorder %s52_s19, %s881_s2  ;;  %p887_p12 = scmp.lt.s32.totalorder %s881_s2, %s881_s2 }
  0x1f   :  { %p888_p13 = por %p887_p12, %p886_p11 }
  0x21   :  { %p889_p0 = pnand %p888_p13, %p882_p10 }
  0x23   :  { %892 = shalt.err (!%p889_p0)
}
  0x24   :  { %57 = dma.hbm_to_vmem [thread:$0]  %s1045_s4, 4096, %s52_s19, [#allocation7], %s943_s10, %s943_s10, %s944_s11  }
  0x25   :  { %s901_s1 = scalar_lea.vmem %s66_s21, 2048  ;;  %p906_p2 = scmp.lt.s32.totalorder %s66_s21, %s66_s21 }
  0x26   :  { %p902_p1 = scmp.ne.s32.totalorder %s66_s21, %s901_s1  ;;  %p907_p3 = scmp.lt.s32.totalorder %s901_s1, %s901_s1 }
  0x28   :  { %p908_p4 = por %p907_p3, %p906_p2 }
  0x2a   :  { %p909_p5 = pnand %p908_p4, %p902_p1 }
  0x2c   :  { %912 = shalt.err (!%p909_p5)
}
  0x2d   :  { %s947_s24 = smov 64   ;;  %s948_s25 = smov 4  }
  0x2e   :  { %71 = dma.hbm_to_vmem [thread:$0]  %s1047_s6, 2048, %s66_s21, [#allocation10], %s947_s24, %s947_s24, %s948_s25  }
  0x2f   :  { %933 = dma.done.wait [#allocation4], 256  }
  0x30   :  { %934 = vsyncadd [#allocation4], 4294967040 }
  0x31   :  { %935 = dma.done.wait [#allocation7], 4352  }
  0x32   :  { %936 = vsyncadd [#allocation7], 4294962944 }
  0x33   :  { %937 = dma.done.wait [#allocation10], 2048  }
  0x34   :  { %938 = vsyncadd [#allocation10], 4294965248  ;;  %v949_v0 = vmov 0   ;;  %v762_v1 = vld [vmem:[#allocation6 + $0x4] ss:$8 sps:$4 sm:$0xff]   ;;  %v87_v3 = vld [vmem:[#allocation3] sm:$0xff]  ;;  %v164_v50 = vlaneseq }
  0x35   :  { %138 = vmatprep.mubr.bf16.mxu0 %v949_v0  ;;  %v764_v2 = vld [vmem:[#allocation6] ss:$8 sps:$4 sm:$0xff]   ;;  %v88_v4 = vld [vmem:[#allocation3 + $0x8] sm:$0xff]  ;;  %120 = vmatprep.subr.bf16.mxu0 %v762_v1  ;;  %v765_v6 = vld [vmem:[#allocation8 + $0x74] ss:$8 sps:$4 sm:$0xff]   ;;  %vm102_vm0 = vcmask 130048  }
  0x36   :  { %v89_v5 = vpack.c.bf16 %v88_v4, %v87_v3  ;;  %121 = vmatpush1.bf16.msra.mxu0 %v764_v2  ;;  %v767_v7 = vld [vmem:[#allocation8 + $0x70] ss:$8 sps:$4 sm:$0xff]   ;;  %385 = vmatprep.subr.bf16.mxu1 %v765_v6  ;;  %v768_v8 = vld [vmem:[#allocation8 + $0x64] ss:$8 sps:$4 sm:$0xff]   ;;  %v770_v9 = vld [vmem:[#allocation8 + $0x60] ss:$8 sps:$4 sm:$0xff]  }
  0x37   :  { %386 = vmatpush1.bf16.msra.mxu1 %v767_v7  ;;  %v771_v10 = vld [vmem:[#allocation8 + $0x54] ss:$8 sps:$4 sm:$0xff]   ;;  %v773_v11 = vld [vmem:[#allocation8 + $0x50] ss:$8 sps:$4 sm:$0xff]   ;;  %v774_v12 = vld [vmem:[#allocation8 + $0x44] ss:$8 sps:$4 sm:$0xff]  }
  0x38   :  { %387 = vmatprep.subr.bf16.mxu1 %v768_v8  ;;  %v776_v13 = vld [vmem:[#allocation8 + $0x40] ss:$8 sps:$4 sm:$0xff]   ;;  %v777_v14 = vld [vmem:[#allocation8 + $0x34] ss:$8 sps:$4 sm:$0xff]   ;;  %v779_v15 = vld [vmem:[#allocation8 + $0x30] ss:$8 sps:$4 sm:$0xff]  }
  0x39   :  { %677 = vmatmul.mubr.msk.bf16.vlgmr.msra.gmra.mxu0 %vm102_vm0, %v89_v5  ;;  %v780_v16 = vld [vmem:[#allocation8 + $0x24] ss:$8 sps:$4 sm:$0xff]   ;;  %v782_v17 = vld [vmem:[#allocation8 + $0x20] ss:$8 sps:$4 sm:$0xff]   ;;  %v783_v18 = vld [vmem:[#allocation8 + $0x14] ss:$8 sps:$4 sm:$0xff]  }
  0x3a   :  { %v785_v19 = vld [vmem:[#allocation8 + $0x10] ss:$8 sps:$4 sm:$0xff]   ;;  %v786_v20 = vld [vmem:[#allocation8 + $0x4] ss:$8 sps:$4 sm:$0xff]   ;;  %v788_v21 = vld [vmem:[#allocation8] ss:$8 sps:$4 sm:$0xff]  }
  0x3b   :  { %388 = vmatpush1.bf16.msra.mxu1 %v770_v9  ;;  %v789_v22 = vld [vmem:[#allocation8 + $0xf4] ss:$8 sps:$4 sm:$0xff]   ;;  %v791_v23 = vld [vmem:[#allocation8 + $0xf0] ss:$8 sps:$4 sm:$0xff]   ;;  %v792_v24 = vld [vmem:[#allocation8 + $0xe4] ss:$8 sps:$4 sm:$0xff]  }
  0x3c   :  { %389 = vmatprep.subr.bf16.mxu1 %v771_v10  ;;  %v794_v25 = vld [vmem:[#allocation8 + $0xe0] ss:$8 sps:$4 sm:$0xff]   ;;  %v795_v26 = vld [vmem:[#allocation8 + $0xd4] ss:$8 sps:$4 sm:$0xff]   ;;  %v797_v27 = vld [vmem:[#allocation8 + $0xd0] ss:$8 sps:$4 sm:$0xff]  }
  0x3d   :  { %v798_v28 = vld [vmem:[#allocation8 + $0xc4] ss:$8 sps:$4 sm:$0xff]   ;;  %v800_v29 = vld [vmem:[#allocation8 + $0xc0] ss:$8 sps:$4 sm:$0xff]   ;;  %v801_v30 = vld [vmem:[#allocation8 + $0xb4] ss:$8 sps:$4 sm:$0xff]  }
  0x3e   :  { %v803_v31 = vld [vmem:[#allocation8 + $0xb0] ss:$8 sps:$4 sm:$0xff]   ;;  %v804_v32 = vld [vmem:[#allocation8 + $0xa4] ss:$8 sps:$4 sm:$0xff]   ;;  %v806_v33 = vld [vmem:[#allocation8 + $0xa0] ss:$8 sps:$4 sm:$0xff]  }
  0x3f   :  { %390 = vmatpush1.bf16.msra.mxu1 %v773_v11  ;;  %v807_v34 = vld [vmem:[#allocation8 + $0x94] ss:$8 sps:$4 sm:$0xff]   ;;  %v809_v35 = vld [vmem:[#allocation8 + $0x90] ss:$8 sps:$4 sm:$0xff]   ;;  %v810_v36 = vld [vmem:[#allocation8 + $0x84] ss:$8 sps:$4 sm:$0xff]  }
  0x40   :  { %391 = vmatprep.subr.bf16.mxu1 %v774_v12  ;;  %v812_v37 = vld [vmem:[#allocation8 + $0x80] ss:$8 sps:$4 sm:$0xff]   ;;  %v813_v38 = vld [vmem:[#allocation9 + $0x78] sm:$0xff]   ;;  %v815_v40 = vld [vmem:[#allocation9 + $0x70] sm:$0xff]   ;;  %v950_v48 = vmov 1966171168  }
  0x41   :  { %v814_v39 = vld [vmem:[#allocation9 + $0x38] sm:$0xff]   ;;  %729 = vmatprep.subr.bf16.mxu0 %v813_v38  ;;  %v816_v41 = vld [vmem:[#allocation9 + $0x30] sm:$0xff]   ;;  %v817_v42 = vld [vmem:[#allocation9 + $0x68] sm:$0xff]   ;;  %v162_v49 = vunpack.c.l.s4 %v950_v48  ;;  %v165_v52 = vshrl.u32 %v164_v50, 7 }
  0x42   :  { %730 = vmatpush3.bf16.msra.mxu0 %v814_v39  ;;  %v818_v43 = vld [vmem:[#allocation9 + $0x28] sm:$0xff]   ;;  %v819_v44 = vld [vmem:[#allocation9 + $0x60] sm:$0xff]   ;;  %v821_v46 = vld [vmem:[#allocation9 + $0x58] sm:$0xff]  }
  0x43   :  { %392 = vmatpush1.bf16.msra.mxu1 %v776_v13  ;;  %731 = vmatprep.subr.bf16.mxu0 %v815_v40  ;;  %v820_v45 = vld [vmem:[#allocation9 + $0x20] sm:$0xff]   ;;  %v822_v47 = vld [vmem:[#allocation9 + $0x18] sm:$0xff]   ;;  %v163_v51 = vunpack.c.0.s8 %v162_v49  ;;  %v180_v60 = vsub.s32 0, %v165_v52  ;;  %v823_v10 = vld [vmem:[#allocation9 + $0x50] sm:$0xff]  }
  0x44   :  { %393 = vmatprep.subr.bf16.mxu1 %v777_v14  ;;  %v678_v53 = vld.sshfl [vmem:[%s1044_s3] sm:$0x11 pattern:$0x75316420]  ;;  %v824_v11 = vld [vmem:[#allocation9 + $0x10] sm:$0xff]   ;;  %v825_v12 = vld [vmem:[#allocation9 + $0x48] sm:$0xff]  }
  0x45   :  { %v166_v54 = vsub.s32 %v163_v51, %v165_v52  ;;  %v160_v55 = vcombine.high %v678_v53, %v678_v53  ;;  %v826_v13 = vld [vmem:[#allocation9 + $0x8] sm:$0xff]   ;;  %v827_v14 = vld [vmem:[#allocation9 + $0x40] sm:$0xff]  }
  0x46   :  { %732 = vmatpush3.bf16.msra.mxu0 %v816_v41 }
  0x47   :  { %394 = vmatpush1.bf16.msra.mxu1 %v779_v15  ;;  %733 = vmatprep.subr.bf16.mxu0 %v817_v42  ;;  %v167_v56 = vrot.slane %v678_v53, %v166_v54  ;;  %v174_v57 = vrot.slane %v160_v55, %v166_v54  ;;  %v828_v15 = vld [vmem:[#allocation9] sm:$0xff]  }
  0x48   :  { %395 = vmatprep.subr.bf16.mxu1 %v780_v16  ;;  %v711_v16 = vld.sshfl [vmem:[%s1046_s5] sm:$0x11 pattern:$0x75316420] }
  0x49   :  { %v176_v59 = vpack.i.b16 %v167_v56, %v167_v56  ;;  %v183_v61 = vpack.i.b16 %v174_v57, %v174_v57 }
  0x4a   :  { %734 = vmatpush3.bf16.msra.mxu0 %v818_v43 }
  0x4b   :  { %396 = vmatpush1.bf16.msra.mxu1 %v782_v17  ;;  %735 = vmatprep.subr.bf16.mxu0 %v819_v44  ;;  %v181_v1 = vrot.slane %v176_v59, %v180_v60  ;;  %v188_v3 = vrot.slane %v183_v61, %v180_v60  ;;  %v439_v17 = vcombine.high %v711_v16, %v711_v16 }
  0x4c   :  { %397 = vmatprep.subr.bf16.mxu1 %v783_v18  ;;  %v446_v18 = vrot.slane %v711_v16, %v166_v54 }
  0x4e   :  { %736 = vmatpush3.bf16.msra.mxu0 %v820_v45 }
  0x4f   :  { %398 = vmatpush1.bf16.msra.mxu1 %v785_v19  ;;  %737 = vmatprep.subr.bf16.mxu0 %v821_v46  ;;  %v453_v19 = vrot.slane %v439_v17, %v166_v54 }
  0x50   :  { %399 = vmatprep.subr.bf16.mxu1 %v786_v20 }
  0x52   :  { %738 = vmatpush3.bf16.msra.mxu0 %v822_v47 }
  0x53   :  { %400 = vmatpush1.bf16.msra.mxu1 %v788_v21  ;;  %739 = vmatprep.subr.bf16.mxu0 %v823_v10  ;;  %v455_v21 = vpack.i.b16 %v446_v18, %v446_v18 }
  0x54   :  { %401 = vmatprep.subr.bf16.mxu1 %v789_v22  ;;  %v462_v22 = vpack.i.b16 %v453_v19, %v453_v19 }
  0x56   :  { %740 = vmatpush3.bf16.msra.mxu0 %v824_v11 }
  0x57   :  { %402 = vmatpush2.bf16.msra.mxu1 %v791_v23  ;;  %741 = vmatprep.subr.bf16.mxu0 %v825_v12 }
  0x58   :  { %403 = vmatprep.subr.bf16.mxu1 %v792_v24 }
  0x5a   :  { %742 = vmatpush3.bf16.msra.mxu0 %v826_v13 }
  0x5b   :  { %404 = vmatpush2.bf16.msra.mxu1 %v794_v25  ;;  %743 = vmatprep.subr.bf16.mxu0 %v827_v14  ;;  %v460_v25 = vrot.slane %v455_v21, %v180_v60 }
  0x5c   :  { %405 = vmatprep.subr.bf16.mxu1 %v795_v26 }
  0x5e   :  { %744 = vmatpush3.bf16.msra.mxu0 %v828_v15 }
  0x5f   :  { %406 = vmatpush2.bf16.msra.mxu1 %v797_v27  ;;  %v467_v27 = vrot.slane %v462_v22, %v180_v60 }
  0x60   :  { %407 = vmatprep.subr.bf16.mxu1 %v798_v28 }
  0x63   :  { %408 = vmatpush2.bf16.msra.mxu1 %v800_v29 }
  0x64   :  { %409 = vmatprep.subr.bf16.mxu1 %v801_v30 }
  0x67   :  { %410 = vmatpush2.bf16.msra.mxu1 %v803_v31 }
  0x68   :  { %411 = vmatprep.subr.bf16.mxu1 %v804_v32 }
  0x6b   :  { %412 = vmatpush2.bf16.msra.mxu1 %v806_v33 }
  0x6c   :  { %413 = vmatprep.subr.bf16.mxu1 %v807_v34 }
  0x6f   :  { %414 = vmatpush2.bf16.msra.mxu1 %v809_v35  ;;  %v712_v35 = vld [vmem:[%s1048_s7] ss:$0 sm:$0xff] }
  0x70   :  { %415 = vmatprep.subr.bf16.mxu1 %v810_v36 }
  0x73   :  { %416 = vmatpush2.bf16.msra.mxu1 %v812_v37 }
  0xf9   :  { %v140_v58 = vpop.f32.mrf.mxu0 }
  0xfb   :  { %v142_v62 = vpop.f32.mrf.mxu0 }
  0xfd   :  { %v144_v63 = vpop.f32.mrf.mxu0 }
  0xfe   :  { %v149_v2 = vpack.c.bf16 %v144_v63, %v140_v58 }
  0xff   :  { %v146_v4 = vpop.f32.mrf.mxu0 }
 0x100   :  { %v150_v5 = vpack.c.bf16 %v146_v4, %v142_v62  ;;  %v189_v6 = vadd.bf16 %v181_v1, %v149_v2 }
 0x102   :  { %v190_v7 = vadd.bf16 %v188_v3, %v150_v5  ;;  %v191_v9 = vmax.bf16 %v949_v0, %v189_v6 }
 0x104   :  { %v192_v8 = vmax.bf16 %v949_v0, %v190_v7 }
 0x106   :  { %417 = vmatprep.mubr.bf16.mxu1 %v192_v8 }
 0x107   :  { %418 = vmatmul.mubr.bf16.vlgmr.msra.gmra.mxu1 %v191_v9 }
 0x1c7   :  { %v419_v20 = vpop.f32.mrf.mxu1 }
 0x1c9   :  { %v421_v23 = vpop.f32.mrf.mxu1 }
 0x1cb   :  { %v423_v24 = vpop.f32.mrf.mxu1 }
 0x1cc   :  { %v428_v26 = vpack.c.bf16 %v423_v24, %v419_v20 }
 0x1cd   :  { %v425_v28 = vpop.f32.mrf.mxu1 }
 0x1ce   :  { %v429_v29 = vpack.c.bf16 %v425_v28, %v421_v23  ;;  %v468_v30 = vadd.bf16 %v460_v25, %v428_v26 }
 0x1d0   :  { %v469_v31 = vadd.bf16 %v467_v27, %v429_v29  ;;  %v470_v33 = vmax.bf16 %v949_v0, %v468_v30 }
 0x1d2   :  { %v471_v32 = vmax.bf16 %v949_v0, %v469_v31  ;;  %v651_v0 = vstv %s1041_s0 }
 0x1d4   :  { %640 = vmatprep.mubr.bf16.mxu0 %v471_v32 }
 0x1d5   :  { %641 = vmatmul.mubr.bf16.vlgmr.msra.gmra.mxu0 %v470_v33 }
 0x295   :  { %v745_v34 = vpop.f32.mrf.mxu0 }
 0x297   :  { %v746_v36 = vpop.f32.mrf.mxu0 }
 0x298   :  { %v747_v37 = vadd.f32 %v746_v36, %v745_v34 }
 0x299   :  { %v748_v38 = vpop.f32.mrf.mxu0 }
 0x29a   :  { %v643_v39 = vadd.f32 %v747_v37, %v712_v35 }
 0x29b   :  { %v749_v40 = vpop.f32.mrf.mxu0 }
 0x29c   :  { %829 = vtanh.f32 %v643_v39  ;;  %v750_v41 = vadd.f32 %v749_v40, %v748_v38 }
 0x29e   :  { %v646_v42 = vadd.f32 %v750_v41, %v712_v35 }
 0x2a0   :  { %831 = vtanh.f32 %v646_v42 }
 0x2a9   :  { %v830_v43 = vpop.eup %829 }
 0x2aa   :  { %v652_v44 = vmul.f32 %v830_v43, %v651_v0 }
 0x2ac   :  { %654 = vst [vmem:[#allocation11] sm:$0xff] %v652_v44 }
 0x2ad   :  { %v832_v45 = vpop.eup %831 }
 0x2ae   :  { %v653_v46 = vmul.f32 %v832_v45, %v651_v0 }
 0x2b0   :  { %655 = vst [vmem:[#allocation11 + $0x8] sm:$0xff] %v653_v46 }
 0x2b1   :  { %660 = vsyncadd [#allocation5], 128  ;;  %s951_s7 = smov [#allocation11]  }
 0x2b2   :  { %s661_s12 = sshll.u32 %s951_s7, 4  ;;  %s662_s12 = int_to_ptr.vmem [resolvable:$true] %s661_s12 }
 0x2b3   :  { %s913_s13 = scalar_lea.vmem %s662_s12, 128  ;;  %s917_s14 = scalar_lea.vmem %s662_s12, 256 }
 0x2b4   :  { %p914_p6 = scmp.ne.s32.totalorder %s662_s12, %s913_s13  ;;  %p918_p7 = scmp.lt.s32.totalorder %s662_s12, %s662_s12 }
 0x2b5   :  { %p919_p8 = scmp.lt.s32.totalorder %s917_s14, %s913_s13 }
 0x2b7   :  { %p920_p9 = por %p919_p8, %p918_p7 }
 0x2b9   :  { %p921_p10 = pnand %p920_p9, %p914_p6 }
 0x2bb   :  { %924 = shalt.err (!%p921_p10)
}
 0x2bc   :  { %667 = dma.vmem_to_hbm [thread:$0]  %s662_s12, 128, %s1049_s8, [#allocation5], %s943_s10, %s943_s10, %s944_s11  }
 0x2bd   :  { %939 = dma.done.wait [#allocation5], 256  }
 0x2be   :  { %940 = vsyncadd [#allocation5], 4294967040 }
 0x2bf   :  { %671 = vsyncpa [#allocation4], 1 }
 0x2c0   :  { %672 = vsyncpa [#allocation7], 1 }
 0x2c1   :  { %673 = vsyncpa [#allocation10], 1 }
 0x2c2   :  { %674 = vsyncpa [#allocation5], 1 }

</bundles_post_ra>
